<compile_context>
chip_gen: v7x
topology: tpu7x:2x2x1
jax: 0.10.0
libtpu: 0.0.40
codegen_flags: <defaults>
</compile_context>

<pallas_src>
import jax
import jax.numpy as jnp
import numpy as np
from jax import lax
from jax.experimental import pallas as pl
from jax.experimental.pallas import tpu as pltpu


def _round_up(v, m):
    return ((v + m - 1) // m) * m


def _vmem_capacity_bytes():
    try:
        return int(pltpu.get_tpu_info().vmem_capacity_bytes)
    except Exception:
        pass
    try:
        kind = jax.devices()[0].device_kind.lower()
        if "v7" in kind:
            return 64 << 20
        return 128 << 20
    except Exception:
        return 64 << 20          # conservative (v7x per-core VMEM)


def _softmax(v):
    e = jnp.exp(v - jnp.max(v, axis=-1, keepdims=True))
    return e / jnp.sum(e, axis=-1, keepdims=True)


# ----------------- kernel 1: assignment (per-graph, padded) -----------------
def _assign_kernel(x_ref, w_ref, b_ref, m_ref, s1_ref, c_ref):
    logits = jnp.dot(x_ref[...], w_ref[...], preferred_element_type=jnp.float32)
    logits = logits + b_ref[...]
    s1 = _softmax(logits)     # softmax in MincutPoolingLayer.forward
    s2 = _softmax(s1)         # softmax again inside mincut_pool (temp == 1.0)
    s1_ref[...] = s1
    c_ref[...] = s2 * m_ref[...]          # padded rows (mask 0) -> zero C rows


def compute_assignment(x_p, w, b, mask_p, *, tile_n):
    bg, ngp, f = x_p.shape
    k = w.shape[1]
    grid = (bg, ngp // tile_n)
    return pl.pallas_call(
        _assign_kernel,
        out_shape=(jax.ShapeDtypeStruct((bg, ngp, k), jnp.float32),
                   jax.ShapeDtypeStruct((bg, ngp, k), jnp.float32)),
        grid_spec=pltpu.PrefetchScalarGridSpec(
            num_scalar_prefetch=0,
            grid=grid,
            in_specs=[pl.BlockSpec((None, tile_n, f), lambda g, j: (g, j, 0)),
                      pl.BlockSpec((f, k), lambda g, j: (0, 0)),
                      pl.BlockSpec((1, k), lambda g, j: (0, 0)),
                      pl.BlockSpec((None, tile_n, 1), lambda g, j: (g, j, 0))],
            out_specs=[pl.BlockSpec((None, tile_n, k), lambda g, j: (g, j, 0)),
                       pl.BlockSpec((None, tile_n, k), lambda g, j: (g, j, 0))]),
        compiler_params=pltpu.CompilerParams(
            dimension_semantics=("parallel", "parallel")),
    )(x_p, w, b, mask_p)


# ----------------- kernel 2: per-graph pooled reductions --------------------
def _pool_kernel(x_ref, adj_ref, cg_ref,
                 outx_ref, outadj_ref, cc_ref, den_ref,
                 cgbf_sc, d_sc):
    j = pl.program_id(1)
    nt = pl.num_programs(1)
    tile_n = x_ref.shape[0]

    @pl.when(j == 0)
    def _():
        outx_ref[...] = jnp.zeros_like(outx_ref)
        outadj_ref[...] = jnp.zeros_like(outadj_ref)
        cc_ref[...] = jnp.zeros_like(cc_ref)
        den_ref[...] = jnp.zeros_like(den_ref)
        d_sc[...] = jnp.zeros_like(d_sc)
        # hoisted once-per-graph bf16 cast of the resident per-graph C block
        cgbf_sc[...] = cg_ref[...].astype(jnp.bfloat16)

    start = pl.multiple_of(j * tile_n, tile_n)
    ct = cg_ref[pl.ds(start, tile_n), :]          # (tile_n, K) f32, tile rows of C_g
    xt = x_ref[...]                               # (tile_n, F)  f32
    at = adj_ref[...]                             # (tile_n, ng_pad) bf16 (dominant stream)

    # contract dim 0 of both operands == (ct.T @ ...) without materializing a transpose
    dn = (((0,), (0,)), ((), ()))
    outx_ref[...] += lax.dot_general(ct, xt, dn, preferred_element_type=jnp.float32)
    cc_ref[...] += lax.dot_general(ct, ct, dn, preferred_element_type=jnp.float32)
    ac = jnp.dot(at, cgbf_sc[...], preferred_element_type=jnp.float32)    # (tile_n, K)
    outadj_ref[...] += lax.dot_general(ct, ac, dn, preferred_element_type=jnp.float32)

    # degree column-sums via an MXU ones-row contraction (f32 accumulation,
    # no tile_n x ng_pad f32 cast), kept in VMEM scratch (no (1, N) output).
    ones_row = jnp.ones((1, tile_n), jnp.bfloat16)
    d_sc[...] += jnp.dot(ones_row, at, preferred_element_type=jnp.float32)  # (1, ng_pad)

    @pl.when(j == nt - 1)
    def _():
        # trace(C_g^T diag(d_g) C_g) = sum_j d_g[j] * ||C_g[j, :]||^2
        rn = jnp.sum(cg_ref[...] * cg_ref[...], axis=1, keepdims=True)      # (ng_pad, 1)
        den_ref[...] = jnp.dot(d_sc[...], rn, preferred_element_type=jnp.float32)


def pooled_reductions(x_p, adj_p, c_p, *, tile_n, vmem_limit):
    bg, ngp, f = x_p.shape
    k = c_p.shape[2]
    grid = (bg, ngp // tile_n)
    return pl.pallas_call(
        _pool_kernel,
        out_shape=(jax.ShapeDtypeStruct((bg, k, f), jnp.float32),
                   jax.ShapeDtypeStruct((bg, k, k), jnp.float32),
                   jax.ShapeDtypeStruct((bg, k, k), jnp.float32),
                   jax.ShapeDtypeStruct((bg, 1, 1), jnp.float32)),
        grid_spec=pltpu.PrefetchScalarGridSpec(
            num_scalar_prefetch=0,
            grid=grid,
            in_specs=[pl.BlockSpec((None, tile_n, f), lambda g, j: (g, j, 0)),
                      pl.BlockSpec((None, tile_n, ngp), lambda g, j: (g, j, 0)),
                      # full per-graph C block; block index constant across j
                      # -> loaded once per graph, resident in VMEM
                      pl.BlockSpec((None, ngp, k), lambda g, j: (g, 0, 0))],
            out_specs=[pl.BlockSpec((None, k, f), lambda g, j: (g, 0, 0)),
                       pl.BlockSpec((None, k, k), lambda g, j: (g, 0, 0)),
                       pl.BlockSpec((None, k, k), lambda g, j: (g, 0, 0)),
                       pl.BlockSpec((None, 1, 1), lambda g, j: (g, 0, 0))],
            scratch_shapes=[pltpu.VMEM((ngp, k), jnp.bfloat16),
                            pltpu.VMEM((1, ngp), jnp.float32)]),
        compiler_params=pltpu.CompilerParams(
            # graph axis: independent -> parallel (megacore on v7x);
            # node-tile axis: reduction -> arbitrary.
            dimension_semantics=("parallel", "arbitrary"),
            vmem_limit_bytes=vmem_limit),
    )(x_p, adj_p, c_p)


# ----------------------------- small helpers --------------------------------
def _block_diag(blocks):
    bg, k, _ = blocks.shape
    out = jnp.zeros((bg * k, bg * k), blocks.dtype)
    for g in range(bg):
        out = out.at[g * k:(g + 1) * k, g * k:(g + 1) * k].set(blocks[g])
    return out


# ----------------------------- full forward (wrapper) -----------------------
def mincut_pooling_forward(x, adj, batch, w, b, *, n_clusters, n_graphs, tile_n=None):
    n, f = x.shape
    k = n_clusters
    bg = n_graphs
    kb = k * bg

    # Per-graph node ranges (host-side; `batch` must be concrete, as in PyG
    # batching). Cross-graph adjacency entries are structurally zero, so only
    # the per-graph diagonal blocks are packed/streamed (~B x less HBM traffic
    # than the dense N x N stream).
    batch_np = np.asarray(batch).astype(np.int64)
    counts = np.bincount(batch_np, minlength=bg)
    ptr = np.concatenate([[0], np.cumsum(counts)])
    assert int(ptr[-1]) == n
    ng_max = int(counts.max()) if n > 0 else 1

    # ---- generation-aware tile / VMEM sizing -------------------------------
    ng_pad = _round_up(max(ng_max, 1), 128)         # lane-dense adjacency columns
    vmem_cap = _vmem_capacity_bytes()
    vmem_budget = (vmem_cap * 3) // 4               # ~25% headroom for compiler scratch
    adj_budget = (vmem_budget * 2) // 5             # double-buffered bf16 adj tiles
    cap = max(128, ((adj_budget // (4 * ng_pad)) // 128) * 128)
    if tile_n is not None:
        cap = max(128, min(cap, _round_up(tile_n, 128)))
    n_tiles = max(1, -(-ng_pad // cap))
    nt128 = ng_pad // 128
    while nt128 % n_tiles != 0:                     # tile divides ng_pad, stays 128-aligned
        n_tiles += 1
    tile = ng_pad // n_tiles
    vmem_limit = int(vmem_budget)

    # ---- pack per-graph blocks (static slices; reads only B * ng^2 of adj) --
    x = jnp.asarray(x, jnp.float32)
    adj = jnp.asarray(adj)
    x_p = jnp.zeros((bg, ng_pad, f), jnp.float32)
    adj_p = jnp.zeros((bg, ng_pad, ng_pad), jnp.bfloat16)
    mask_p = jnp.zeros((bg, ng_pad, 1), jnp.float32)
    for g in range(bg):
        p, ng = int(ptr[g]), int(counts[g])
        if ng == 0:
            continue
        x_p = x_p.at[g, :ng, :].set(x[p:p + ng, :])
        adj_p = adj_p.at[g, :ng, :ng].set(adj[p:p + ng, p:p + ng].astype(jnp.bfloat16))
        mask_p = mask_p.at[g, :ng, 0].set(1.0)

    w = jnp.asarray(w, jnp.float32)
    b2 = jnp.asarray(b, jnp.float32).reshape(1, k)

    # Pallas: linear + double softmax + masked per-graph assignment C
    s1_p, c_p = compute_assignment(x_p, w, b2, mask_p, tile_n=tile)

    # Pallas: all node-dimension reductions / matmuls (per-graph bf16 adjacency)
    out_x_p, out_adj_blk, cc_blk, den_blk = pooled_reductions(
        x_p, adj_p, c_p, tile_n=tile, vmem_limit=vmem_limit)

    # ---- tiny [K*B]-sized loss / normalization glue ------------------------
    out_x_raw = out_x_p.reshape(kb, f)

    denom = jnp.sum(den_blk)
    mincut_loss = -jnp.sum(jnp.trace(out_adj_blk, axis1=1, axis2=2)) / denom

    cc_batch = jnp.repeat(jnp.arange(bg, dtype=jnp.int32), k)
    cc_norm = jnp.sqrt(jnp.sum(cc_blk * cc_blk, axis=(1, 2)))        # per-graph ||CC_b||_F
    m = cc_blk / cc_norm[:, None, None] - jnp.eye(k, dtype=jnp.float32) / jnp.sqrt(float(k))
    ortho_loss = jnp.mean(jnp.sqrt(jnp.sum(m * m, axis=(1, 2))))

    out_adj_full = _block_diag(out_adj_blk)                           # (KB, KB)
    out_adj = out_adj_full * (1.0 - jnp.eye(kb, dtype=jnp.float32))   # mask_diagonal_sp
    deg = jnp.sqrt(jnp.sum(out_adj, axis=1)) + 1e-12
    out_adj_normalized = out_adj / deg[:, None] / deg[None, :]

    out_x = jax.nn.selu(out_x_raw)                                    # batch.x = selu(out_x)
    new_ptr = jnp.arange(bg + 1, dtype=jnp.int32) * k                 # batch2ptr(out_batch)
    s1 = jnp.concatenate([s1_p[g, :int(counts[g]), :] for g in range(bg)], axis=0)

    # TODO(synk): to_edge_index / to_undirected edge-list extraction from the
    # pooled adjacency (dynamic sparse output) has no clean Pallas equivalent.
    return out_x, out_adj_normalized, mincut_loss, ortho_loss, cc_batch, new_ptr, s1


# ----------------------------- demo ------------------------------------------
if __name__ == "__main__":
    N, F, K, B = 30, 16, 4, 2          # 2 graphs x 15 nodes
    key = jax.random.PRNGKey(0)
    kx, ka, kw, kb_ = jax.random.split(key, 4)

    x = jax.random.normal(kx, (N, F), dtype=jnp.float32)
    batch = jnp.concatenate([jnp.zeros(N // 2, jnp.int32), jnp.ones(N - N // 2, jnp.int32)])

    # synthetic dense, symmetric, non-negative, within-graph adjacency
    a = jax.random.uniform(ka, (N, N), dtype=jnp.float32)
    a = 0.5 * (a + a.T)
    same_graph = (batch[:, None] == batch[None, :]).astype(jnp.float32)
    adj = a * same_graph * (1.0 - jnp.eye(N, dtype=jnp.float32))

    # deterministic Linear(F -> K) parameters (synthetic init, not a checkpoint)
    w = jax.random.normal(kw, (F, K), dtype=jnp.float32) * 0.1
    b = jax.random.normal(kb_, (1, K), dtype=jnp.float32) * 0.01

    outs = mincut_pooling_forward(x, adj, batch, w, b, n_clusters=K, n_graphs=B)
    outs = jax.block_until_ready(outs)

    out_x, out_adj, mincut_loss, ortho_loss, out_batch, new_ptr, s = outs
    assert out_x.shape == (K * B, F)
    assert out_adj.shape == (K * B, K * B)
    assert out_batch.shape == (K * B,)
    assert s.shape == (N, K)
    assert jnp.isfinite(mincut_loss) and jnp.isfinite(ortho_loss)
    print("KERNEL_OK")
</pallas_src>

<mosaic_0001>
module attributes {stable_mosaic.version = 11 : i64} {
  func.func @_assign_kernel(%arg0: i32, %arg1: i32, %arg2: memref<1x128x16xf32, #tpu.memory_space<vmem>>, %arg3: memref<16x4xf32, #tpu.memory_space<vmem>>, %arg4: memref<1x4xf32, #tpu.memory_space<vmem>>, %arg5: memref<1x128x1xf32, #tpu.memory_space<vmem>>, %arg6: memref<1x128x4xf32, #tpu.memory_space<vmem>>, %arg7: memref<1x128x4xf32, #tpu.memory_space<vmem>>) attributes {dimension_semantics = [#tpu.dimension_semantics<parallel>, #tpu.dimension_semantics<parallel>], iteration_bounds = array<i64: 2, 1>, scalar_prefetch = 0 : i64, scratch_operands = 0 : i64, tpu.core_type = #tpu.core_type<tc>, window_params = [{transform_indices = @transform_0, window_bounds = array<i64: 1, 128, 16>}, {pipeline_mode = #tpu.pipeline_mode<synchronous>, transform_indices = @transform_1, window_bounds = array<i64: 16, 4>}, {pipeline_mode = #tpu.pipeline_mode<synchronous>, transform_indices = @transform_2, window_bounds = array<i64: 1, 4>}, {transform_indices = @transform_3, window_bounds = array<i64: 1, 128, 1>}, {transform_indices = @transform_4, window_bounds = array<i64: 1, 128, 4>}, {transform_indices = @transform_5, window_bounds = array<i64: 1, 128, 4>}]} {
    %c0 = arith.constant 0 : index
    %c0_0 = arith.constant 0 : index
    %c0_1 = arith.constant 0 : index
    %0 = vector.load %arg2[%c0, %c0_0, %c0_1] : memref<1x128x16xf32, #tpu.memory_space<vmem>>, vector<1x128x16xf32>
    %1 = vector.shape_cast %0 : vector<1x128x16xf32> to vector<128x16xf32>
    %c0_2 = arith.constant 0 : index
    %c0_3 = arith.constant 0 : index
    %2 = vector.load %arg3[%c0_2, %c0_3] : memref<16x4xf32, #tpu.memory_space<vmem>>, vector<16x4xf32>
    %cst = arith.constant dense<0.000000e+00> : vector<128x4xf32>
    %3 = tpu.matmul %1, %2, %cst {dimension_numbers = #tpu.dot_dimension_numbers<[1], [0], [0], [1], [0, 0, 1, 1], [], []>} : vector<128x16xf32>, vector<16x4xf32>, vector<128x4xf32> -> vector<128x4xf32>
    %c0_4 = arith.constant 0 : index
    %c0_5 = arith.constant 0 : index
    %4 = vector.load %arg4[%c0_4, %c0_5] : memref<1x4xf32, #tpu.memory_space<vmem>>, vector<1x4xf32>
    %5 = vector.broadcast %4 : vector<1x4xf32> to vector<128x4xf32>
    %6 = arith.addf %3, %5 : vector<128x4xf32>
    %cst_6 = arith.constant dense<0xFF800000> : vector<128xf32>
    %7 = vector.multi_reduction <maximumf>, %6, %cst_6 [1] : vector<128x4xf32> to vector<128xf32>
    %8 = vector.shape_cast %7 : vector<128xf32> to vector<128x1xf32>
    %9 = vector.broadcast %8 : vector<128x1xf32> to vector<128x4xf32>
    %10 = arith.subf %6, %9 : vector<128x4xf32>
    %11 = math.exp %10 : vector<128x4xf32>
    %cst_7 = arith.constant dense<0.000000e+00> : vector<128xf32>
    %12 = vector.multi_reduction <add>, %11, %cst_7 [1] : vector<128x4xf32> to vector<128xf32>
    %13 = vector.shape_cast %12 : vector<128xf32> to vector<128x1xf32>
    %14 = vector.broadcast %13 : vector<128x1xf32> to vector<128x4xf32>
    %15 = arith.divf %11, %14 : vector<128x4xf32>
    %cst_8 = arith.constant dense<0xFF800000> : vector<128xf32>
    %16 = vector.multi_reduction <maximumf>, %15, %cst_8 [1] : vector<128x4xf32> to vector<128xf32>
    %17 = vector.shape_cast %16 : vector<128xf32> to vector<128x1xf32>
    %18 = vector.broadcast %17 : vector<128x1xf32> to vector<128x4xf32>
    %19 = arith.subf %15, %18 : vector<128x4xf32>
    %20 = math.exp %19 : vector<128x4xf32>
    %cst_9 = arith.constant dense<0.000000e+00> : vector<128xf32>
    %21 = vector.multi_reduction <add>, %20, %cst_9 [1] : vector<128x4xf32> to vector<128xf32>
    %22 = vector.shape_cast %21 : vector<128xf32> to vector<128x1xf32>
    %23 = vector.broadcast %22 : vector<128x1xf32> to vector<128x4xf32>
    %24 = arith.divf %20, %23 : vector<128x4xf32>
    %c0_10 = arith.constant 0 : index
    %c0_11 = arith.constant 0 : index
    %c0_12 = arith.constant 0 : index
    %25 = vector.load %arg6[%c0_10, %c0_11, %c0_12] : memref<1x128x4xf32, #tpu.memory_space<vmem>>, vector<1x128x4xf32>
    %26 = vector.shape_cast %25 : vector<1x128x4xf32> to vector<128x4xf32>
    %27 = vector.shape_cast %15 : vector<128x4xf32> to vector<1x128x4xf32>
    tpu.vector_store %arg6[%c0_10, %c0_11, %c0_12], %27 {strides = array<i32>} : memref<1x128x4xf32, #tpu.memory_space<vmem>>, vector<1x128x4xf32>,
    %c0_13 = arith.constant 0 : index
    %c0_14 = arith.constant 0 : index
    %c0_15 = arith.constant 0 : index
    %28 = vector.load %arg5[%c0_13, %c0_14, %c0_15] : memref<1x128x1xf32, #tpu.memory_space<vmem>>, vector<1x128x1xf32>
    %29 = vector.shape_cast %28 : vector<1x128x1xf32> to vector<128x1xf32>
    %30 = vector.broadcast %29 : vector<128x1xf32> to vector<128x4xf32>
    %31 = arith.mulf %24, %30 : vector<128x4xf32>
    %c0_16 = arith.constant 0 : index
    %c0_17 = arith.constant 0 : index
    %c0_18 = arith.constant 0 : index
    %32 = vector.load %arg7[%c0_16, %c0_17, %c0_18] : memref<1x128x4xf32, #tpu.memory_space<vmem>>, vector<1x128x4xf32>
    %33 = vector.shape_cast %32 : vector<1x128x4xf32> to vector<128x4xf32>
    %34 = vector.shape_cast %31 : vector<128x4xf32> to vector<1x128x4xf32>
    tpu.vector_store %arg7[%c0_16, %c0_17, %c0_18], %34 {strides = array<i32>} : memref<1x128x4xf32, #tpu.memory_space<vmem>>, vector<1x128x4xf32>,
    return
  }
  func.func @transform_0(%arg0: i32, %arg1: i32) -> (i32, i32, i32) {
    %c0_i32 = arith.constant 0 : i32
    %c0_i32_0 = arith.constant 0 : i32
    return %arg0, %arg1, %c0_i32 : i32, i32, i32
  }
  func.func @transform_1(%arg0: i32, %arg1: i32) -> (i32, i32) {
    %c0_i32 = arith.constant 0 : i32
    %c0_i32_0 = arith.constant 0 : i32
    %c0_i32_1 = arith.constant 0 : i32
    return %c0_i32, %c0_i32_0 : i32, i32
  }
  func.func @transform_2(%arg0: i32, %arg1: i32) -> (i32, i32) {
    %c0_i32 = arith.constant 0 : i32
    %c0_i32_0 = arith.constant 0 : i32
    %c0_i32_1 = arith.constant 0 : i32
    return %c0_i32, %c0_i32_0 : i32, i32
  }
  func.func @transform_3(%arg0: i32, %arg1: i32) -> (i32, i32, i32) {
    %c0_i32 = arith.constant 0 : i32
    %c0_i32_0 = arith.constant 0 : i32
    return %arg0, %arg1, %c0_i32 : i32, i32, i32
  }
  func.func @transform_4(%arg0: i32, %arg1: i32) -> (i32, i32, i32) {
    %c0_i32 = arith.constant 0 : i32
    %c0_i32_0 = arith.constant 0 : i32
    return %arg0, %arg1, %c0_i32 : i32, i32, i32
  }
  func.func @transform_5(%arg0: i32, %arg1: i32) -> (i32, i32, i32) {
    %c0_i32 = arith.constant 0 : i32
    %c0_i32_0 = arith.constant 0 : i32
    return %arg0, %arg1, %c0_i32 : i32, i32, i32
  }
}

</mosaic_0001>

<bundles_post_ra>
// kernel: tpu_custom_call.1
= control target key start
LH: loop header
LB: loop body
LE: loop exit
PB: predicated region body
PF: predicated region fallthrough
CT: control target
= control target key end

     0   :  { %s1493_s18 = smov 0   ;;  %s1495_s19 = smov 0   ;;  %s2027_s0 = inlined_call_operand.vmem [shape: f32[2,128,16], index: 0, kind: input, shape index: {}]   ;;  %s2028_s1 = inlined_call_operand.vmem [shape: f32[16,4], index: 1, kind: input, shape index: {}]   ;;  %s2029_s2 = inlined_call_operand.vmem [shape: f32[1,4], index: 2, kind: input, shape index: {}]   ;;  %s2030_s3 = inlined_call_operand.vmem [shape: f32[2,128,1], index: 3, kind: input, shape index: {}]   ;;  %s2031_s4 = inlined_call_operand.vmem [shape: f32[2,128,4], index: 4, kind: output, shape index: {0}]   ;;  %s2032_s5 = inlined_call_operand.vmem [shape: f32[2,128,4], index: 5, kind: output, shape index: {1}]  }
   0x1   :  { %s1497_s20 = smov 0  }
   0x2 LB: > { %s28_s21 = sadd.s32 1, %s1456_s19  ;;  %p1199_p0 = scmp.ge.s32.totalorder %s1460_s20, 1  ;;  %s1460_s20 = sphi %s1497_s20, %s16_s20   ;;  %s1456_s19 = sphi %s1495_s19, %s2034_s19   ;;  %s1452_s18 = sphi %s1493_s18, %s2033_s18  }
   0x3   : > { %p30_p1 = scmp.ge.s32.totalorder %s28_s21, 2  ;;  %p230_p2 = scmp.lt.s32.totalorder %s1460_s20, 3 }
   0x5   : > { %s2036_s21 = smov (%p30_p1, %s28_s21), 0  ;;  %p231_p3 = pnand %p1199_p0, %p230_p2 }
   0x6   : > { %v340_v0 = vld [vmem:[%s2028_s1] sm:$0xff] (!%p231_p3)  ;;  %v341_v1 = vld [vmem:[%s2028_s1 + $0x8] sm:$0xff] (!%p231_p3)  ;;  %p285_p4 = scmp.lt.s32.totalorder (!%p231_p3), %s1452_s18, 1  ;;  %vm349_vm0 = vcmask (!%p231_p3), 130048   ;;  %v1462_v19 = vmov (!%p231_p3), 0   ;;  %vm543_vm1 = vcmask (!%p231_p3), 31744  }
   0x7   : > { %234 = sbr.rel (%p231_p3) target bundleno = 898 (0x382), region = 36  ;;  %v1277_v2 = vpack.c.bf16 (!%p231_p3), %v341_v1, %v340_v0  ;;  %1309 = vset.pattern.permute.xlu1 (!%p231_p3), %v1462_v19  ;;  %1308 = vset.pattern.permute.xlu0 (!%p231_p3), %v1462_v19  ;;  %v1208_v20 = vld [vmem:[%s2029_s2] ss:$0 sm:$0xff] (!%p231_p3) }
   0x9   : > { %1278 = vmatprep.subr.bf16.mxu0 (!%p231_p3), %v1277_v2  ;;  %1281 = vmatprep.subr.bf16.mxu1 (!%p231_p3), %v1277_v2 }
   0xa   : > { %1280 = vmatpush3.bf16.msra.mxu0 (!%p231_p3), %v1277_v2  ;;  %1282 = vmatpush3.bf16.msra.mxu1 (!%p231_p3), %v1277_v2 }
   0xe   : > { %s2038_s18 = smov (!%p285_p4, %s1452_s18), 1 }
   0xf   : > { %s1517_s26 = sshll.u32 %s2038_s18, 7 }
  0x10   : > { %s292_s29 = scalar_lea.vmem %s2027_s0, %s1517_s26  ;;  %s1610_s9 = scalar_lea.vmem %s2030_s3, %s1517_s26 }
  0x11   : > { %v324_v3 = vld [vmem:[%s292_s29] sm:$0xff]  ;;  %v325_v5 = vld [vmem:[%s292_s29 + $0x8] sm:$0xff]  ;;  %v326_v7 = vld [vmem:[%s292_s29 + $0x10] sm:$0xff]  ;;  %s1726_s12 = scalar_lea.vmem %s2031_s4, %s1517_s26  ;;  %s1955_s15 = scalar_lea.vmem %s2032_s5, %s1517_s26 }
  0x12   : > { %v332_v4 = vld [vmem:[%s292_s29 + $0x40] sm:$0xff]  ;;  %1253 = vmatprep.mubr.msk.f32.mxu0 %vm349_vm0, %v324_v3  ;;  %v333_v6 = vld [vmem:[%s292_s29 + $0x48] sm:$0xff]  ;;  %v334_v8 = vld [vmem:[%s292_s29 + $0x50] sm:$0xff] }
  0x13   : > { %1265 = vmatprep.mubr.msk.f32.mxu1 %vm349_vm0, %v332_v4  ;;  %1254 = vmatmul.mubr.msk.f32.vlgmr.msra.gmra.mrb[0].mxu0 %vm349_vm0, %v325_v5  ;;  %v327_v9 = vld [vmem:[%s292_s29 + $0x18] sm:$0xff]  ;;  %v328_v11 = vld [vmem:[%s292_s29 + $0x20] sm:$0xff]  ;;  %v329_v13 = vld [vmem:[%s292_s29 + $0x28] sm:$0xff] }
  0x14   : > { %1266 = vmatmul.mubr.msk.f32.vlgmr.msra.gmra.mrb[0].mxu1 %vm349_vm0, %v333_v6  ;;  %1256 = vmatprep.mubr.msk.f32.mxu0 %vm349_vm0, %v326_v7  ;;  %v335_v10 = vld [vmem:[%s292_s29 + $0x58] sm:$0xff]  ;;  %v336_v12 = vld [vmem:[%s292_s29 + $0x60] sm:$0xff]  ;;  %v337_v14 = vld [vmem:[%s292_s29 + $0x68] sm:$0xff] }
  0x15   : > { %1268 = vmatprep.mubr.msk.f32.mxu1 %vm349_vm0, %v334_v8  ;;  %v330_v15 = vld [vmem:[%s292_s29 + $0x30] sm:$0xff]  ;;  %v331_v17 = vld [vmem:[%s292_s29 + $0x38] sm:$0xff]  ;;  %v913_v5 = vld [vmem:[%s1610_s9 + $0x8] sm:$0xff] }
  0x16   : > { %v338_v16 = vld [vmem:[%s292_s29 + $0x70] sm:$0xff]  ;;  %v339_v18 = vld [vmem:[%s292_s29 + $0x78] sm:$0xff]  ;;  %v912_v7 = vld [vmem:[%s1610_s9] sm:$0xff] }
  0x17   : > { %1257 = vmatmul.mubr.msk.f32.gmra.mrb[2].mxu0 %vm349_vm0, %v327_v9  ;;  %v914_v6 = vld [vmem:[%s1610_s9 + $0x10] sm:$0xff]  ;;  %v915_v8 = vld [vmem:[%s1610_s9 + $0x18] sm:$0xff]  ;;  %v916_v9 = vld [vmem:[%s1610_s9 + $0x20] sm:$0xff] }
  0x18   : > { %1269 = vmatmul.mubr.msk.f32.gmra.mrb[2].mxu1 %vm349_vm0, %v335_v10  ;;  %1259 = vmatprep.mubr.msk.f32.mxu0 %vm349_vm0, %v328_v11  ;;  %v917_v10 = vld [vmem:[%s1610_s9 + $0x28] sm:$0xff]  ;;  %v918_v11 = vld [vmem:[%s1610_s9 + $0x30] sm:$0xff] }
  0x19   : > { %1271 = vmatprep.mubr.msk.f32.mxu1 %vm349_vm0, %v336_v12  ;;  %v919_v12 = vld [vmem:[%s1610_s9 + $0x38] sm:$0xff] }
  0x1b   : > { %1260 = vmatmul.mubr.msk.f32.gmra.mrb[4].mxu0 %vm349_vm0, %v329_v13  ;;  %v920_v13 = vld [vmem:[%s1610_s9 + $0x40] sm:$0xff] }
  0x1c   : > { %1272 = vmatmul.mubr.msk.f32.gmra.mrb[4].mxu1 %vm349_vm0, %v337_v14  ;;  %1262 = vmatprep.mubr.msk.f32.mxu0 %vm349_vm0, %v330_v15 }
  0x1d   : > { %1274 = vmatprep.mubr.msk.f32.mxu1 %vm349_vm0, %v338_v16 }
  0x1f   : > { %1263 = vmatmul.mubr.msk.f32.gmra.mrb[6].mxu0 %vm349_vm0, %v331_v17 }
  0x20   : > { %1275 = vmatmul.mubr.msk.f32.gmra.mrb[6].mxu1 %vm349_vm0, %v339_v18 }
  0xe6   : > { %v1255_v21 = vpop.f32.mrb[0].mxu0 }
  0xe7   : > { %v1267_v22 = vpop.f32.mrb[0].mxu1  ;;  %v1542_v23 = vadd.f32 %v1255_v21, %v1208_v20  ;;  %v464_v25 = vpop.f32.mrb[1].mxu0 }
  0xe8   : > { %v1544_v24 = vadd.f32 %v1267_v22, %v1208_v20  ;;  %v504_v26 = vpop.f32.mrb[1].mxu1  ;;  %v1546_v27 = vadd.f32 %v1208_v20, %v464_v25 }
  0xe9   : > { %v547_v29 = vsel %vm543_vm1, %v1542_v23, -inf  ;;  %v1556_v36 = vadd.f32 %v1208_v20, %v504_v26 }
  0xea   : > { %v571_v28 = vsel %vm543_vm1, %v1544_v24, -inf  ;;  %548 = vmax.xlane.f32.xlu0 %v547_v29  ;;  %v1258_v30 = vpop.f32.mrb[2].mxu0  ;;  %v544_v38 = vsel %vm543_vm1, %v1546_v27, -inf }
  0xeb   : > { %572 = vmax.xlane.f32.xlu1 %v571_v28  ;;  %v1270_v31 = vpop.f32.mrb[2].mxu1  ;;  %v1552_v32 = vadd.f32 %v1258_v30, %v1208_v20  ;;  %v474_v33 = vpop.f32.mrb[3].mxu0  ;;  %v568_v46 = vsel %vm543_vm1, %v1556_v36, -inf }
  0xec   : > { %v1554_v34 = vadd.f32 %v1270_v31, %v1208_v20  ;;  %v514_v35 = vpop.f32.mrb[3].mxu1  ;;  %v1564_v44 = vadd.f32 %v1208_v20, %v474_v33 }
  0xed   : > { %v553_v37 = vsel %vm543_vm1, %v1552_v32, -inf  ;;  %v1566_v45 = vadd.f32 %v1208_v20, %v514_v35 }
  0xee   : > { %545 = vmax.xlane.f32.xlu0 %v544_v38  ;;  %v1261_v39 = vpop.f32.mrb[4].mxu0  ;;  %v577_v41 = vsel %vm543_vm1, %v1554_v34, -inf  ;;  %v550_v53 = vsel %vm543_vm1, %v1564_v44, -inf }
  0xef   : > { %554 = vmax.xlane.f32.xlu1 %v553_v37  ;;  %v1273_v40 = vpop.f32.mrb[4].mxu1  ;;  %v484_v42 = vpop.f32.mrb[5].mxu0  ;;  %v1570_v49 = vadd.f32 %v1261_v39, %v1208_v20  ;;  %v574_v54 = vsel %vm543_vm1, %v1566_v45, -inf }
  0xf0   : > { %v524_v43 = vpop.f32.mrb[5].mxu1  ;;  %v1572_v50 = vadd.f32 %v1208_v20, %v484_v42  ;;  %v1578_v55 = vadd.f32 %v1273_v40, %v1208_v20 }
  0xf1   : > { %v1580_v56 = vadd.f32 %v1208_v20, %v524_v43  ;;  %v559_v57 = vsel %vm543_vm1, %v1570_v49, -inf }
  0xf2   : > { %569 = vmax.xlane.f32.xlu0 %v568_v46  ;;  %v1264_v47 = vpop.f32.mrb[6].mxu0  ;;  %v556_v58 = vsel %vm543_vm1, %v1572_v50, -inf  ;;  %v583_v61 = vsel %vm543_vm1, %v1578_v55, -inf }
  0xf3   : > { %578 = vmax.xlane.f32.xlu1 %v577_v41  ;;  %v1276_v48 = vpop.f32.mrb[6].mxu1  ;;  %v494_v51 = vpop.f32.mrb[7].mxu0  ;;  %v1586_v59 = vadd.f32 %v1264_v47, %v1208_v20  ;;  %v580_v62 = vsel %vm543_vm1, %v1580_v56, -inf }
  0xf4   : > { %v534_v52 = vpop.f32.mrb[7].mxu1  ;;  %v1588_v60 = vadd.f32 %v1208_v20, %v494_v51  ;;  %v1594_v63 = vadd.f32 %v1276_v48, %v1208_v20 }
  0xf5   : > { %v1596_v0 = vadd.f32 %v1208_v20, %v534_v52  ;;  %v565_v1 = vsel %vm543_vm1, %v1586_v59, -inf }
  0xf6   : > { %575 = vmax.xlane.f32.xlu0 %v574_v54  ;;  %v562_v2 = vsel %vm543_vm1, %v1588_v60, -inf  ;;  %v589_v3 = vsel %vm543_vm1, %v1594_v63, -inf }
  0xf7   : > { %551 = vmax.xlane.f32.xlu1 %v550_v53  ;;  %v586_v4 = vsel %vm543_vm1, %v1596_v0, -inf }
  0xfa   : > { %557 = vmax.xlane.f32.xlu0 %v556_v58 }
  0xfb   : > { %560 = vmax.xlane.f32.xlu1 %v559_v57 }
  0xfe   : > { %581 = vmax.xlane.f32.xlu0 %v580_v62 }
  0xff   : > { %584 = vmax.xlane.f32.xlu1 %v583_v61 }
 0x102   : > { %563 = vmax.xlane.f32.xlu0 %v562_v2 }
 0x103   : > { %566 = vmax.xlane.f32.xlu1 %v565_v1 }
 0x106   : > { %587 = vmax.xlane.f32.xlu0 %v586_v4 }
 0x107   : > { %590 = vmax.xlane.f32.xlu1 %v589_v3 }
 0x118   : > { %935 = vperm.xlu1 %1309, %v913_v5  }
 0x11c   : > { %940 = vperm.xlu1 %1309, %v914_v6   ;;  %930 = vperm.xlu0 %1308, %v912_v7  }
 0x120   : > { %945 = vperm.xlu1 %1309, %v915_v8  }
 0x124   : > { %950 = vperm.xlu1 %1309, %v916_v9  }
 0x128   : > { %955 = vperm.xlu1 %1309, %v917_v10  }
 0x12c   : > { %960 = vperm.xlu1 %1309, %v918_v11  }
 0x130   : > { %965 = vperm.xlu1 %1309, %v919_v12  }
 0x134   : > { %970 = vperm.xlu1 %1309, %v920_v13  }
 0x177   : > { %v549_v15 = vpop.xlane.xlu0 %548 }
 0x178   : > { %v573_v14 = vpop.xlane.xlu1 %572  ;;  %v593_v17 = vsub.f32 %v1542_v23, %v549_v15 }
 0x179   : > { %v601_v16 = vsub.f32 %v1544_v24, %v573_v14 }
 0x17a   : > { %v610_v19 = vmul.f32 1.442695, %v593_v17 }
 0x17b   : > { %v626_v18 = vmul.f32 1.442695, %v601_v16  ;;  %v546_v21 = vpop.xlane.xlu0 %545 }
 0x17c   : > { %v555_v20 = vpop.xlane.xlu1 %554  ;;  %v592_v25 = vsub.f32 %v1546_v27, %v546_v21  ;;  %1310 = vpow2.f32 %v610_v19 }
 0x17d   : > { %v595_v22 = vsub.f32 %v1552_v32, %v555_v20  ;;  %1312 = vpow2.f32 %v626_v18 }
 0x17e   : > { %v608_v28 = vmul.f32 1.442695, %v592_v25 }
 0x17f   : > { %v614_v26 = vmul.f32 1.442695, %v595_v22  ;;  %v570_v30 = vpop.xlane.xlu0 %569 }
 0x180   : > { %v579_v29 = vpop.xlane.xlu1 %578  ;;  %v600_v24 = vsub.f32 %v1556_v36, %v570_v30  ;;  %1314 = vpow2.f32 %v608_v28 }
 0x181   : > { %v603_v31 = vsub.f32 %v1554_v34, %v579_v29  ;;  %1316 = vpow2.f32 %v614_v26 }
 0x182   : > { %v624_v23 = vmul.f32 1.442695, %v600_v24 }
 0x183   : > { %v630_v33 = vmul.f32 1.442695, %v603_v31  ;;  %v576_v37 = vpop.xlane.xlu0 %575 }
 0x184   : > { %v552_v35 = vpop.xlane.xlu1 %551  ;;  %v602_v27 = vsub.f32 %v1566_v45, %v576_v37  ;;  %1318 = vpow2.f32 %v624_v23  ;;  %v922_v23 = vld [vmem:[%s1610_s9 + $0x50] sm:$0xff] }
 0x185   : > { %v594_v32 = vsub.f32 %v1564_v44, %v552_v35  ;;  %1320 = vpow2.f32 %v630_v33  ;;  %v921_v33 = vld [vmem:[%s1610_s9 + $0x48] sm:$0xff]  ;;  %v923_v35 = vld [vmem:[%s1610_s9 + $0x58] sm:$0xff] }
 0x186   : > { %v1629_v39 = vpop.eup %1310  ;;  %v628_v40 = vmul.f32 1.442695, %v602_v27 }
 0x187   : > { %v612_v38 = vmul.f32 1.442695, %v594_v32  ;;  %v558_v34 = vpop.xlane.xlu0 %557  ;;  %v1631_v42 = vpop.eup %1312  ;;  %v643_v44 = vsel %vm543_vm1, %v1629_v39, 0.0 }
 0x188   : > { %v561_v41 = vpop.xlane.xlu1 %560  ;;  %v596_v43 = vsub.f32 %v1572_v50, %v558_v34  ;;  %644 = vadd.xlane.f32.xlu1 %v643_v44  ;;  %v667_v52 = vsel %vm543_vm1, %v1631_v42, 0.0 }
 0x189   : > { %1322 = vpow2.f32 %v612_v38  ;;  %v597_v36 = vsub.f32 %v1570_v49, %v561_v41 }
 0x18a   : > { %v1637_v46 = vpop.eup %1314  ;;  %1324 = vpow2.f32 %v628_v40  ;;  %v616_v47 = vmul.f32 1.442695, %v596_v43 }
 0x18b   : > { %v618_v45 = vmul.f32 1.442695, %v597_v36  ;;  %v582_v51 = vpop.xlane.xlu0 %581  ;;  %v1641_v53 = vpop.eup %1316  ;;  %v640_v54 = vsel %vm543_vm1, %v1637_v46, 0.0 }
 0x18c   : > { %v585_v48 = vpop.xlane.xlu1 %584  ;;  %v604_v50 = vsub.f32 %v1580_v56, %v582_v51  ;;  %668 = vadd.xlane.f32.xlu1 %v667_v52  ;;  %641 = vadd.xlane.f32.xlu0 %v640_v54  ;;  %v649_v2 = vsel %vm543_vm1, %v1641_v53, 0.0 }
 0x18d   : > { %1326 = vpow2.f32 %v618_v45  ;;  %v605_v49 = vsub.f32 %v1578_v55, %v585_v48 }
 0x18e   : > { %v1647_v58 = vpop.eup %1318  ;;  %1328 = vpow2.f32 %v616_v47  ;;  %v632_v61 = vmul.f32 1.442695, %v604_v50 }
 0x18f   : > { %v634_v57 = vmul.f32 1.442695, %v605_v49  ;;  %v564_v1 = vpop.xlane.xlu0 %563  ;;  %v664_v3 = vsel %vm543_vm1, %v1647_v58, 0.0  ;;  %v1655_v4 = vpop.eup %1320 }
 0x190   : > { %v567_v62 = vpop.xlane.xlu1 %566  ;;  %v598_v56 = vsub.f32 %v1588_v60, %v564_v1  ;;  %650 = vadd.xlane.f32.xlu1 %v649_v2  ;;  %665 = vadd.xlane.f32.xlu0 %v664_v3  ;;  %v673_v11 = vsel %vm543_vm1, %v1655_v4, 0.0 }
 0x191   : > { %1330 = vpow2.f32 %v634_v57  ;;  %v599_v55 = vsub.f32 %v1586_v59, %v567_v62 }
 0x192   : > { %1332 = vpow2.f32 %v632_v61  ;;  %v620_v7 = vmul.f32 1.442695, %v598_v56 }
 0x193   : > { %v1657_v5 = vpop.eup %1322  ;;  %v622_v6 = vmul.f32 1.442695, %v599_v55  ;;  %v588_v9 = vpop.xlane.xlu0 %587 }
 0x194   : > { %v591_v8 = vpop.xlane.xlu1 %590  ;;  %v646_v10 = vsel %vm543_vm1, %v1657_v5, 0.0  ;;  %v606_v60 = vsub.f32 %v1596_v0, %v588_v9  ;;  %v1665_v12 = vpop.eup %1324  ;;  %674 = vadd.xlane.f32.xlu1 %v673_v11 }
 0x195   : > { %1334 = vpow2.f32 %v622_v6  ;;  %v607_v59 = vsub.f32 %v1594_v63, %v591_v8  ;;  %647 = vadd.xlane.f32.xlu0 %v646_v10  ;;  %v670_v63 = vsel %vm543_vm1, %v1665_v12, 0.0 }
 0x196   : > { %1336 = vpow2.f32 %v620_v7  ;;  %v636_v15 = vmul.f32 1.442695, %v606_v60 }
 0x197   : > { %v1667_v13 = vpop.eup %1326  ;;  %v638_v14 = vmul.f32 1.442695, %v607_v59 }
 0x198   : > { %v655_v16 = vsel %vm543_vm1, %v1667_v13, 0.0  ;;  %v1673_v0 = vpop.eup %1328  ;;  %v1704_v37 = vpop.permute.xlu1 %935 }
 0x199   : > { %1338 = vpow2.f32 %v638_v14  ;;  %656 = vadd.xlane.f32.xlu1 %v655_v16  ;;  %671 = vadd.xlane.f32.xlu0 %v670_v63  ;;  %v652_v19 = vsel %vm543_vm1, %v1673_v0, 0.0 }
 0x19a   : > { %1340 = vpow2.f32 %v636_v15 }
 0x19b   : > { %v1675_v17 = vpop.eup %1330  ;;  %v1720_v43 = vpop.permute.xlu0 %930 }
 0x19c   : > { %v679_v18 = vsel %vm543_vm1, %v1675_v17, 0.0  ;;  %v1681_v20 = vpop.eup %1332  ;;  %v1706_v32 = vpop.permute.xlu1 %940 }
 0x19d   : > { %680 = vadd.xlane.f32.xlu1 %v679_v18  ;;  %653 = vadd.xlane.f32.xlu0 %v652_v19  ;;  %v676_v25 = vsel %vm543_vm1, %v1681_v20, 0.0 }
 0x19f   : > { %v1683_v21 = vpop.eup %1334 }
 0x1a0   : > { %v661_v22 = vsel %vm543_vm1, %v1683_v21, 0.0  ;;  %v1689_v26 = vpop.eup %1336  ;;  %v1708_v27 = vpop.permute.xlu1 %945 }
 0x1a1   : > { %662 = vadd.xlane.f32.xlu1 %v661_v22  ;;  %677 = vadd.xlane.f32.xlu0 %v676_v25  ;;  %v658_v30 = vsel %vm543_vm1, %v1689_v26, 0.0 }
 0x1a3   : > { %v1691_v28 = vpop.eup %1338 }
 0x1a4   : > { %v685_v29 = vsel %vm543_vm1, %v1691_v28, 0.0  ;;  %v1697_v31 = vpop.eup %1340  ;;  %v1710_v38 = vpop.permute.xlu1 %950 }
 0x1a5   : > { %686 = vadd.xlane.f32.xlu1 %v685_v29  ;;  %659 = vadd.xlane.f32.xlu0 %v658_v30  ;;  %v682_v24 = vsel %vm543_vm1, %v1697_v31, 0.0 }
 0x1a8   : > { %v1712_v40 = vpop.permute.xlu1 %955 }
 0x1a9   : > { %683 = vadd.xlane.f32.xlu0 %v682_v24 }
 0x1ac   : > { %v1714_v41 = vpop.permute.xlu1 %960 }
 0x1b0   : > { %v1716_v34 = vpop.permute.xlu1 %965 }
 0x1b4   : > { %v1718_v36 = vpop.permute.xlu1 %970 }
 0x1b6   : > { %980 = vperm.xlu1 %1309, %v922_v23  }
 0x1bf   : > { %975 = vperm.xlu0 %1308, %v921_v33  }
 0x1c3   : > { %985 = vperm.xlu0 %1308, %v923_v35  }
 0x215   : > { %v645_v44 = vpop.xlane.xlu1 %644 }
 0x216   : > { %1342 = vrcp.f32 %v645_v44 }
 0x219   : > { %v669_v45 = vpop.xlane.xlu1 %668  ;;  %v642_v47 = vpop.xlane.xlu0 %641 }
 0x21a   : > { %1344 = vrcp.f32 %v669_v45 }
 0x21b   : > { %1346 = vrcp.f32 %v642_v47 }
 0x21d   : > { %v651_v48 = vpop.xlane.xlu1 %650  ;;  %v666_v51 = vpop.xlane.xlu0 %665 }
 0x21e   : > { %1348 = vrcp.f32 %v651_v48 }
 0x21f   : > { %1350 = vrcp.f32 %v666_v51 }
 0x220   : > { %v1343_v52 = vpop.eup %1342 }
 0x221   : > { %v675_v49 = vpop.xlane.xlu1 %674  ;;  %v1729_v54 = vmul.f32 %v1343_v52, %v1629_v39 }
 0x222   : > { %v648_v50 = vpop.xlane.xlu0 %647  ;;  %1352 = vrcp.f32 %v675_v49 }
 0x223   : > { %1354 = vrcp.f32 %v648_v50  ;;  %v723_v57 = vsel %vm543_vm1, %v1729_v54, -inf  ;;  %897 = vst.msk [vmem:[%s1726_s12 + $0x8] sm:$0xff] %vm543_vm1, %v1729_v54 }
 0x224   : > { %v1345_v61 = vpop.eup %1344  ;;  %724 = vmax.xlane.f32.xlu1 %v723_v57 }
 0x225   : > { %v1347_v62 = vpop.eup %1346  ;;  %v1737_v55 = vmul.f32 %v1345_v61, %v1631_v42 }
 0x226   : > { %v657_v1 = vpop.xlane.xlu1 %656  ;;  %v672_v2 = vpop.xlane.xlu0 %671  ;;  %v1740_v39 = vmul.f32 %v1347_v62, %v1637_v46  ;;  %v924_v62 = vld [vmem:[%s1610_s9 + $0x60] sm:$0xff] }
 0x227   : > { %1356 = vrcp.f32 %v657_v1  ;;  %v747_v56 = vsel %vm543_vm1, %v1737_v55, -inf  ;;  %905 = vst.msk [vmem:[%s1726_s12 + $0x48] sm:$0xff] %vm543_vm1, %v1737_v55  ;;  %v925_v1 = vld [vmem:[%s1610_s9 + $0x68] sm:$0xff] }
 0x228   : > { %1358 = vrcp.f32 %v672_v2  ;;  %v1349_v3 = vpop.eup %1348  ;;  %748 = vmax.xlane.f32.xlu1 %v747_v56  ;;  %v720_v6 = vsel %vm543_vm1, %v1740_v39, -inf  ;;  %896 = vst.msk [vmem:[%s1726_s12] sm:$0xff] %vm543_vm1, %v1740_v39 }
 0x229   : > { %v1351_v42 = vpop.eup %1350  ;;  %721 = vmax.xlane.f32.xlu0 %v720_v6  ;;  %v1753_v8 = vmul.f32 %v1349_v3, %v1641_v53 }
 0x22a   : > { %v681_v46 = vpop.xlane.xlu1 %680  ;;  %v654_v7 = vpop.xlane.xlu0 %653  ;;  %v1756_v9 = vmul.f32 %v1351_v42, %v1647_v58 }
 0x22b   : > { %1360 = vrcp.f32 %v681_v46  ;;  %v729_v10 = vsel %vm543_vm1, %v1753_v8, -inf  ;;  %899 = vst.msk [vmem:[%s1726_s12 + $0x18] sm:$0xff] %vm543_vm1, %v1753_v8 }
 0x22c   : > { %1362 = vrcp.f32 %v654_v7  ;;  %v1353_v59 = vpop.eup %1352  ;;  %730 = vmax.xlane.f32.xlu1 %v729_v10  ;;  %v744_v60 = vsel %vm543_vm1, %v1756_v9, -inf  ;;  %904 = vst.msk [vmem:[%s1726_s12 + $0x40] sm:$0xff] %vm543_vm1, %v1756_v9 }
 0x22d   : > { %v1355_v53 = vpop.eup %1354  ;;  %745 = vmax.xlane.f32.xlu0 %v744_v60  ;;  %v1769_v14 = vmul.f32 %v1353_v59, %v1655_v4 }
 0x22e   : > { %v663_v58 = vpop.xlane.xlu1 %662  ;;  %v678_v11 = vpop.xlane.xlu0 %677  ;;  %v1772_v15 = vmul.f32 %v1355_v53, %v1657_v5 }
 0x22f   : > { %1364 = vrcp.f32 %v663_v58  ;;  %v753_v16 = vsel %vm543_vm1, %v1769_v14, -inf  ;;  %907 = vst.msk [vmem:[%s1726_s12 + $0x58] sm:$0xff] %vm543_vm1, %v1769_v14 }
 0x230   : > { %1366 = vrcp.f32 %v678_v11  ;;  %754 = vmax.xlane.f32.xlu1 %v753_v16  ;;  %v726_v18 = vsel %vm543_vm1, %v1772_v15, -inf  ;;  %898 = vst.msk [vmem:[%s1726_s12 + $0x10] sm:$0xff] %vm543_vm1, %v1772_v15 }
 0x231   : > { %v1357_v63 = vpop.eup %1356  ;;  %727 = vmax.xlane.f32.xlu0 %v726_v18 }
 0x232   : > { %v1359_v4 = vpop.eup %1358  ;;  %v687_v5 = vpop.xlane.xlu1 %686  ;;  %v1785_v22 = vmul.f32 %v1357_v63, %v1667_v13 }
 0x233   : > { %v660_v19 = vpop.xlane.xlu0 %659  ;;  %1368 = vrcp.f32 %v687_v5  ;;  %v1788_v25 = vmul.f32 %v1359_v4, %v1665_v12 }
 0x234   : > { %1370 = vrcp.f32 %v660_v19  ;;  %v735_v29 = vsel %vm543_vm1, %v1785_v22, -inf  ;;  %901 = vst.msk [vmem:[%s1726_s12 + $0x28] sm:$0xff] %vm543_vm1, %v1785_v22 }
 0x235   : > { %v1361_v30 = vpop.eup %1360  ;;  %736 = vmax.xlane.f32.xlu1 %v735_v29  ;;  %v750_v24 = vsel %vm543_vm1, %v1788_v25, -inf  ;;  %906 = vst.msk [vmem:[%s1726_s12 + $0x50] sm:$0xff] %vm543_vm1, %v1788_v25 }
 0x236   : > { %v1363_v13 = vpop.eup %1362  ;;  %751 = vmax.xlane.f32.xlu0 %v750_v24  ;;  %v1801_v23 = vmul.f32 %v1361_v30, %v1675_v17  ;;  %v1860_v56 = vpop.permute.xlu1 %980 }
 0x237   : > { %v684_v12 = vpop.xlane.xlu0 %683  ;;  %v1804_v33 = vmul.f32 %v1363_v13, %v1673_v0 }
 0x238   : > { %1372 = vrcp.f32 %v684_v12  ;;  %v759_v35 = vsel %vm543_vm1, %v1801_v23, -inf  ;;  %909 = vst.msk [vmem:[%s1726_s12 + $0x68] sm:$0xff] %vm543_vm1, %v1801_v23 }
 0x239   : > { %v1365_v44 = vpop.eup %1364  ;;  %760 = vmax.xlane.f32.xlu1 %v759_v35  ;;  %v732_v45 = vsel %vm543_vm1, %v1804_v33, -inf  ;;  %900 = vst.msk [vmem:[%s1726_s12 + $0x20] sm:$0xff] %vm543_vm1, %v1804_v33 }
 0x23a   : > { %v1367_v17 = vpop.eup %1366  ;;  %733 = vmax.xlane.f32.xlu0 %v732_v45  ;;  %v1817_v0 = vmul.f32 %v1365_v44, %v1683_v21 }
 0x23b   : > { %v1820_v47 = vmul.f32 %v1367_v17, %v1681_v20 }
 0x23c   : > { %v741_v48 = vsel %vm543_vm1, %v1817_v0, -inf  ;;  %903 = vst.msk [vmem:[%s1726_s12 + $0x38] sm:$0xff] %vm543_vm1, %v1817_v0 }
 0x23d   : > { %v1369_v51 = vpop.eup %1368  ;;  %742 = vmax.xlane.f32.xlu1 %v741_v48  ;;  %v756_v52 = vsel %vm543_vm1, %v1820_v47, -inf  ;;  %908 = vst.msk [vmem:[%s1726_s12 + $0x60] sm:$0xff] %vm543_vm1, %v1820_v47 }
 0x23e   : > { %v1371_v21 = vpop.eup %1370  ;;  %757 = vmax.xlane.f32.xlu0 %v756_v52  ;;  %v1833_v20 = vmul.f32 %v1369_v51, %v1691_v28  ;;  %v1858_v2 = vpop.permute.xlu0 %975 }
 0x23f   : > { %v1836_v49 = vmul.f32 %v1371_v21, %v1689_v26 }
 0x240   : > { %v765_v50 = vsel %vm543_vm1, %v1833_v20, -inf  ;;  %911 = vst.msk [vmem:[%s1726_s12 + $0x78] sm:$0xff] %vm543_vm1, %v1833_v20 }
 0x241   : > { %766 = vmax.xlane.f32.xlu1 %v765_v50  ;;  %v738_v61 = vsel %vm543_vm1, %v1836_v49, -inf  ;;  %902 = vst.msk [vmem:[%s1726_s12 + $0x30] sm:$0xff] %vm543_vm1, %v1836_v49 }
 0x242   : > { %v1373_v57 = vpop.eup %1372  ;;  %739 = vmax.xlane.f32.xlu0 %v738_v61  ;;  %v1862_v6 = vpop.permute.xlu0 %985 }
 0x243   : > { %v1849_v28 = vmul.f32 %v1373_v57, %v1697_v31 }
 0x245   : > { %v762_v26 = vsel %vm543_vm1, %v1849_v28, -inf  ;;  %910 = vst.msk [vmem:[%s1726_s12 + $0x70] sm:$0xff] %vm543_vm1, %v1849_v28 }
 0x246   : > { %763 = vmax.xlane.f32.xlu0 %v762_v26 }
 0x252   : > { %990 = vperm.xlu1 %1309, %v924_v62  }
 0x25c   : > { %995 = vperm.xlu0 %1308, %v925_v1  }
 0x2b1   : > { %v725_v3 = vpop.xlane.xlu1 %724 }
 0x2b2   : > { %v769_v31 = vsub.f32 %v1729_v54, %v725_v3 }
 0x2b4   : > { %v786_v42 = vmul.f32 1.442695, %v769_v31 }
 0x2b5   : > { %v749_v46 = vpop.xlane.xlu1 %748 }
 0x2b6   : > { %1374 = vpow2.f32 %v786_v42  ;;  %v777_v7 = vsub.f32 %v1737_v55, %v749_v46  ;;  %v722_v10 = vpop.xlane.xlu0 %721 }
 0x2b7   : > { %v768_v59 = vsub.f32 %v1740_v39, %v722_v10 }
 0x2b8   : > { %v802_v60 = vmul.f32 1.442695, %v777_v7 }
 0x2b9   : > { %v784_v53 = vmul.f32 1.442695, %v768_v59  ;;  %v731_v58 = vpop.xlane.xlu1 %730 }
 0x2ba   : > { %1376 = vpow2.f32 %v802_v60  ;;  %v771_v11 = vsub.f32 %v1753_v8, %v731_v58  ;;  %v746_v16 = vpop.xlane.xlu0 %745 }
 0x2bb   : > { %1378 = vpow2.f32 %v784_v53  ;;  %v776_v63 = vsub.f32 %v1756_v9, %v746_v16 }
 0x2bc   : > { %v790_v18 = vmul.f32 1.442695, %v771_v11 }
 0x2bd   : > { %v800_v54 = vmul.f32 1.442695, %v776_v63  ;;  %v755_v4 = vpop.xlane.xlu1 %754 }
 0x2be   : > { %1380 = vpow2.f32 %v790_v18  ;;  %v779_v5 = vsub.f32 %v1769_v14, %v755_v4  ;;  %v728_v55 = vpop.xlane.xlu0 %727 }
 0x2bf   : > { %1382 = vpow2.f32 %v800_v54  ;;  %v770_v39 = vsub.f32 %v1772_v15, %v728_v55 }
 0x2c0   : > { %v1871_v19 = vpop.eup %1374  ;;  %v806_v29 = vmul.f32 1.442695, %v779_v5 }
 0x2c1   : > { %v788_v30 = vmul.f32 1.442695, %v770_v39  ;;  %v819_v8 = vsel %vm543_vm1, %v1871_v19, 0.0 }
 0x2c2   : > { %v737_v24 = vpop.xlane.xlu1 %736  ;;  %1384 = vpow2.f32 %v806_v29  ;;  %820 = vadd.xlane.f32.xlu1 %v819_v8 }
 0x2c3   : > { %v773_v9 = vsub.f32 %v1785_v22, %v737_v24  ;;  %v752_v13 = vpop.xlane.xlu0 %751  ;;  %1386 = vpow2.f32 %v788_v30 }
 0x2c4   : > { %v778_v14 = vsub.f32 %v1788_v25, %v752_v13  ;;  %v1877_v12 = vpop.eup %1376 }
 0x2c5   : > { %v794_v35 = vmul.f32 1.442695, %v773_v9  ;;  %v1879_v15 = vpop.eup %1378  ;;  %v843_v17 = vsel %vm543_vm1, %v1877_v12, 0.0 }
 0x2c6   : > { %v804_v44 = vmul.f32 1.442695, %v778_v14  ;;  %v761_v45 = vpop.xlane.xlu1 %760  ;;  %844 = vadd.xlane.f32.xlu1 %v843_v17  ;;  %v816_v22 = vsel %vm543_vm1, %v1879_v15, 0.0  ;;  %v927_v17 = vld [vmem:[%s1610_s9 + $0x78] sm:$0xff] }
 0x2c7   : > { %1388 = vpow2.f32 %v794_v35  ;;  %v781_v48 = vsub.f32 %v1801_v23, %v761_v45  ;;  %v734_v51 = vpop.xlane.xlu0 %733  ;;  %817 = vadd.xlane.f32.xlu0 %v816_v22  ;;  %v926_v45 = vld [vmem:[%s1610_s9 + $0x70] sm:$0xff] }
 0x2c8   : > { %1390 = vpow2.f32 %v804_v44  ;;  %v772_v25 = vsub.f32 %v1804_v33, %v734_v51  ;;  %v1887_v52 = vpop.eup %1380 }
 0x2c9   : > { %v810_v21 = vmul.f32 1.442695, %v781_v48  ;;  %v1889_v50 = vpop.eup %1382  ;;  %v825_v26 = vsel %vm543_vm1, %v1887_v52, 0.0 }
 0x2ca   : > { %v792_v57 = vmul.f32 1.442695, %v772_v25  ;;  %v743_v61 = vpop.xlane.xlu1 %742  ;;  %826 = vadd.xlane.f32.xlu1 %v825_v26  ;;  %v840_v1 = vsel %vm543_vm1, %v1889_v50, 0.0 }
 0x2cb   : > { %1392 = vpow2.f32 %v810_v21  ;;  %v775_v23 = vsub.f32 %v1817_v0, %v743_v61  ;;  %v758_v62 = vpop.xlane.xlu0 %757  ;;  %841 = vadd.xlane.f32.xlu0 %v840_v1 }
 0x2cc   : > { %1394 = vpow2.f32 %v792_v57  ;;  %v780_v33 = vsub.f32 %v1820_v47, %v758_v62  ;;  %v1897_v3 = vpop.eup %1384 }
 0x2cd   : > { %v798_v31 = vmul.f32 1.442695, %v775_v23  ;;  %v1899_v42 = vpop.eup %1386  ;;  %v849_v10 = vsel %vm543_vm1, %v1897_v3, 0.0 }
 0x2ce   : > { %v808_v46 = vmul.f32 1.442695, %v780_v33  ;;  %v767_v7 = vpop.xlane.xlu1 %766  ;;  %850 = vadd.xlane.f32.xlu1 %v849_v10  ;;  %v822_v60 = vsel %vm543_vm1, %v1899_v42, 0.0 }
 0x2cf   : > { %1396 = vpow2.f32 %v798_v31  ;;  %v783_v0 = vsub.f32 %v1833_v20, %v767_v7  ;;  %v740_v59 = vpop.xlane.xlu0 %739  ;;  %823 = vadd.xlane.f32.xlu0 %v822_v60 }
 0x2d0   : > { %1398 = vpow2.f32 %v808_v46  ;;  %v774_v47 = vsub.f32 %v1836_v49, %v740_v59 }
 0x2d1   : > { %v1907_v53 = vpop.eup %1388  ;;  %v814_v58 = vmul.f32 1.442695, %v783_v0 }
 0x2d2   : > { %v1909_v11 = vpop.eup %1390  ;;  %v796_v16 = vmul.f32 1.442695, %v774_v47  ;;  %v831_v63 = vsel %vm543_vm1, %v1907_v53, 0.0  ;;  %v1946_v48 = vpop.permute.xlu1 %990 }
 0x2d3   : > { %1400 = vpow2.f32 %v814_v58  ;;  %v764_v20 = vpop.xlane.xlu0 %763  ;;  %832 = vadd.xlane.f32.xlu1 %v831_v63  ;;  %v846_v18 = vsel %vm543_vm1, %v1909_v11, 0.0 }
 0x2d4   : > { %1402 = vpow2.f32 %v796_v16  ;;  %v782_v54 = vsub.f32 %v1849_v28, %v764_v20  ;;  %847 = vadd.xlane.f32.xlu0 %v846_v18 }
 0x2d5   : > { %v1916_v49 = vpop.eup %1392 }
 0x2d6   : > { %v1918_v4 = vpop.eup %1394  ;;  %v812_v5 = vmul.f32 1.442695, %v782_v54  ;;  %v855_v55 = vsel %vm543_vm1, %v1916_v49, 0.0 }
 0x2d7   : > { %856 = vadd.xlane.f32.xlu1 %v855_v55  ;;  %v828_v39 = vsel %vm543_vm1, %v1918_v4, 0.0 }
 0x2d8   : > { %1404 = vpow2.f32 %v812_v5  ;;  %829 = vadd.xlane.f32.xlu0 %v828_v39 }
 0x2d9   : > { %v1924_v29 = vpop.eup %1396 }
 0x2da   : > { %v1926_v30 = vpop.eup %1398  ;;  %v837_v28 = vsel %vm543_vm1, %v1924_v29, 0.0 }
 0x2db   : > { %838 = vadd.xlane.f32.xlu1 %v837_v28  ;;  %v852_v24 = vsel %vm543_vm1, %v1926_v30, 0.0  ;;  %v1948_v22 = vpop.permute.xlu0 %995 }
 0x2dc   : > { %853 = vadd.xlane.f32.xlu0 %v852_v24 }
 0x2dd   : > { %v1932_v8 = vpop.eup %1400 }
 0x2de   : > { %v1934_v9 = vpop.eup %1402  ;;  %v861_v13 = vsel %vm543_vm1, %v1932_v8, 0.0 }
 0x2df   : > { %862 = vadd.xlane.f32.xlu1 %v861_v13  ;;  %v834_v14 = vsel %vm543_vm1, %v1934_v9, 0.0 }
 0x2e0   : > { %835 = vadd.xlane.f32.xlu0 %v834_v14 }
 0x2e2   : > { %v1940_v35 = vpop.eup %1404 }
 0x2e3   : > { %v858_v44 = vsel %vm543_vm1, %v1940_v35, 0.0 }
 0x2e4   : > { %859 = vadd.xlane.f32.xlu0 %v858_v44 }
 0x2f0   : > { %1000 = vperm.xlu1 %1309, %v926_v45  }
 0x2fa   : > { %1005 = vperm.xlu0 %1308, %v927_v17  }
 0x34f   : > { %v821_v51 = vpop.xlane.xlu1 %820 }
 0x350   : > { %1406 = vrcp.f32 %v821_v51 }
 0x353   : > { %v845_v25 = vpop.xlane.xlu1 %844 }
 0x354   : > { %1408 = vrcp.f32 %v845_v25  ;;  %v818_v21 = vpop.xlane.xlu0 %817 }
 0x355   : > { %1410 = vrcp.f32 %v818_v21 }
 0x357   : > { %v827_v57 = vpop.xlane.xlu1 %826 }
 0x358   : > { %1412 = vrcp.f32 %v827_v57  ;;  %v842_v61 = vpop.xlane.xlu0 %841 }
 0x359   : > { %1414 = vrcp.f32 %v842_v61 }
 0x35a   : > { %v1407_v26 = vpop.eup %1406 }
 0x35b   : > { %v867_v23 = vmul.f32 %v1407_v26, %v1871_v19  ;;  %v851_v62 = vpop.xlane.xlu1 %850 }
 0x35c   : > { %1416 = vrcp.f32 %v851_v62  ;;  %v824_v1 = vpop.xlane.xlu0 %823 }
 0x35d   : > { %v1009_v33 = vmul.f32 %v1704_v37, %v867_v23  ;;  %1418 = vrcp.f32 %v824_v1 }
 0x35e   : > { %v1409_v31 = vpop.eup %1408 }
 0x35f   : > { %v1411_v46 = vpop.eup %1410  ;;  %1025 = vst.msk [vmem:[%s1955_s15 + $0x8] sm:$0xff] %vm543_vm1, %v1009_v33  ;;  %v883_v19 = vmul.f32 %v1409_v31, %v1877_v12 }
 0x360   : > { %v833_v7 = vpop.xlane.xlu1 %832  ;;  %v865_v10 = vmul.f32 %v1411_v46, %v1879_v15 }
 0x361   : > { %1420 = vrcp.f32 %v833_v7  ;;  %v848_v0 = vpop.xlane.xlu0 %847  ;;  %v1017_v59 = vmul.f32 %v1858_v2, %v883_v19 }
 0x362   : > { %1422 = vrcp.f32 %v848_v0  ;;  %v1413_v60 = vpop.eup %1412  ;;  %v1008_v37 = vmul.f32 %v1720_v43, %v865_v10 }
 0x363   : > { %v1415_v47 = vpop.eup %1414  ;;  %1033 = vst.msk [vmem:[%s1955_s15 + $0x48] sm:$0xff] %vm543_vm1, %v1017_v59  ;;  %v871_v58 = vmul.f32 %v1413_v60, %v1887_v52 }
 0x364   : > { %v857_v16 = vpop.xlane.xlu1 %856  ;;  %1024 = vst.msk [vmem:[%s1955_s15] sm:$0xff] %vm543_vm1, %v1008_v37  ;;  %v881_v12 = vmul.f32 %v1415_v47, %v1889_v50 }
 0x365   : > { %1424 = vrcp.f32 %v857_v16  ;;  %v830_v15 = vpop.xlane.xlu0 %829  ;;  %v1011_v2 = vmul.f32 %v1708_v27, %v871_v58 }
 0x366   : > { %1426 = vrcp.f32 %v830_v15  ;;  %v1417_v63 = vpop.eup %1416  ;;  %v1016_v43 = vmul.f32 %v1718_v36, %v881_v12 }
 0x367   : > { %v1419_v20 = vpop.eup %1418  ;;  %1027 = vst.msk [vmem:[%s1955_s15 + $0x18] sm:$0xff] %vm543_vm1, %v1011_v2  ;;  %v887_v52 = vmul.f32 %v1417_v63, %v1897_v3 }
 0x368   : > { %v839_v18 = vpop.xlane.xlu1 %838  ;;  %1032 = vst.msk [vmem:[%s1955_s15 + $0x40] sm:$0xff] %vm543_vm1, %v1016_v43  ;;  %v869_v50 = vmul.f32 %v1419_v20, %v1899_v42 }
 0x369   : > { %1428 = vrcp.f32 %v839_v18  ;;  %v854_v54 = vpop.xlane.xlu0 %853  ;;  %v1019_v27 = vmul.f32 %v1862_v6, %v887_v52 }
 0x36a   : > { %1430 = vrcp.f32 %v854_v54  ;;  %v1010_v36 = vmul.f32 %v1706_v32, %v869_v50 }
 0x36b   : > { %v1421_v5 = vpop.eup %1420  ;;  %1035 = vst.msk [vmem:[%s1955_s15 + $0x58] sm:$0xff] %vm543_vm1, %v1019_v27 }
 0x36c   : > { %v1423_v55 = vpop.eup %1422  ;;  %v875_v3 = vmul.f32 %v1421_v5, %v1907_v53  ;;  %v863_v39 = vpop.xlane.xlu1 %862  ;;  %1026 = vst.msk [vmem:[%s1955_s15 + $0x10] sm:$0xff] %vm543_vm1, %v1010_v36 }
 0x36d   : > { %v885_v42 = vmul.f32 %v1423_v55, %v1909_v11  ;;  %1432 = vrcp.f32 %v863_v39  ;;  %v836_v28 = vpop.xlane.xlu0 %835 }
 0x36e   : > { %v1013_v6 = vmul.f32 %v1712_v40, %v875_v3  ;;  %1434 = vrcp.f32 %v836_v28 }
 0x36f   : > { %v1425_v24 = vpop.eup %1424  ;;  %v1018_v32 = vmul.f32 %v1860_v56, %v885_v42 }
 0x370   : > { %v1427_v13 = vpop.eup %1426  ;;  %1029 = vst.msk [vmem:[%s1955_s15 + $0x28] sm:$0xff] %vm543_vm1, %v1013_v6  ;;  %v891_v53 = vmul.f32 %v1425_v24, %v1916_v49 }
 0x371   : > { %1034 = vst.msk [vmem:[%s1955_s15 + $0x50] sm:$0xff] %vm543_vm1, %v1018_v32  ;;  %v873_v11 = vmul.f32 %v1427_v13, %v1918_v4  ;;  %v860_v14 = vpop.xlane.xlu0 %859 }
 0x372   : > { %v1021_v44 = vmul.f32 %v1948_v22, %v891_v53  ;;  %1436 = vrcp.f32 %v860_v14 }
 0x373   : > { %v1429_v40 = vpop.eup %1428  ;;  %v1012_v45 = vmul.f32 %v1710_v38, %v873_v11 }
 0x374   : > { %v1431_v17 = vpop.eup %1430  ;;  %1037 = vst.msk [vmem:[%s1955_s15 + $0x68] sm:$0xff] %vm543_vm1, %v1021_v44  ;;  %v879_v56 = vmul.f32 %v1429_v40, %v1924_v29 }
 0x375   : > { %1028 = vst.msk [vmem:[%s1955_s15 + $0x20] sm:$0xff] %vm543_vm1, %v1012_v45  ;;  %v889_v49 = vmul.f32 %v1431_v17, %v1926_v30 }
 0x376   : > { %v1015_v4 = vmul.f32 %v1716_v34, %v879_v56 }
 0x377   : > { %v1433_v51 = vpop.eup %1432  ;;  %v1020_v22 = vmul.f32 %v1946_v48, %v889_v49  ;;  %v1001_v48 = vpop.permute.xlu1 %1000 }
 0x378   : > { %v1435_v25 = vpop.eup %1434  ;;  %1031 = vst.msk [vmem:[%s1955_s15 + $0x38] sm:$0xff] %vm543_vm1, %v1015_v4  ;;  %v895_v38 = vmul.f32 %v1433_v51, %v1932_v8 }
 0x379   : > { %1036 = vst.msk [vmem:[%s1955_s15 + $0x60] sm:$0xff] %vm543_vm1, %v1020_v22  ;;  %v877_v29 = vmul.f32 %v1435_v25, %v1934_v9  ;;  %v1006_v21 = vpop.permute.xlu0 %1005 }
 0x37a   : > { %v1023_v57 = vmul.f32 %v1006_v21, %v895_v38 }
 0x37b   : > { %v1014_v61 = vmul.f32 %v1714_v41, %v877_v29 }
 0x37c   : > { %v1437_v30 = vpop.eup %1436  ;;  %1039 = vst.msk [vmem:[%s1955_s15 + $0x78] sm:$0xff] %vm543_vm1, %v1023_v57 }
 0x37d   : > { %1030 = vst.msk [vmem:[%s1955_s15 + $0x30] sm:$0xff] %vm543_vm1, %v1014_v61  ;;  %v893_v34 = vmul.f32 %v1437_v30, %v1940_v35 }
 0x37f   : > { %v1022_v26 = vmul.f32 %v1001_v48, %v893_v34 }
 0x381   : > { %1038 = vst.msk [vmem:[%s1955_s15 + $0x70] sm:$0xff] %vm543_vm1, %v1022_v26 }
 0x382 PF: > { %s16_s20 = sadd.s32 1, %s1460_s20   ;;  %s2033_s18 = smov %s1456_s19 }
 0x383   : > { %p13_p5 = scmp.ge.s32.totalorder %s16_s20, 4   ;;  %s2034_s19 = smov %s2036_s21 }
 0x385   :  { %15 = sbr.rel (!%p13_p5) target bundleno = 2 (0x2), region = 81 }

</bundles_post_ra>
